<compile_context>
chip_gen: v5e
topology: v5e:2x2
jax: 0.10.0
libtpu: 0.0.40
codegen_flags: <defaults>
</compile_context>

<pallas_src>
import math

import jax
import jax.numpy as jnp
from jax.experimental import pallas as pl
from jax.experimental.pallas import tpu as pltpu


def _round_up(v, m):
    return ((v + m - 1) // m) * m


def _sublane(dtype):
    # Packed-sublane alignment: f32 -> 8, bf16 -> 16, int8/fp8 -> 32.
    return max(8, 32 // jnp.dtype(dtype).itemsize)


def _vmem_budgets():
    """Returns (vmem_limit_bytes for CompilerParams, tile-sizing budget)."""
    phys = None
    try:
        fn = getattr(pltpu, "get_tpu_info", None)
        if fn is not None:
            phys = int(fn().vmem_capacity_bytes)
    except Exception:
        phys = None
    if phys:
        # Leave headroom for Mosaic internal scratch; 3/4 of physical, capped.
        vmem_limit = min((phys * 3) // 4, 112 * 1024 * 1024)
    else:
        # Conservative fallback; safe on every generation (v7x: 64 MiB phys).
        vmem_limit = 32 * 1024 * 1024
    budget = (vmem_limit * 4) // 5  # our buffers get ~80% of the limit
    return vmem_limit, budget


def _pick_tile(dim, max_tile, align):
    """Tile size: multiple of `align`, bounded by max_tile, minimal padding.

    If the aligned dim fits in a single tile, cover it exactly (no
    over-padding, one block). Otherwise choose among halvings of max_tile
    (down to max(align, 128)) the candidate with the smallest padded extent;
    ties prefer the larger tile.
    """
    dim_al = _round_up(dim, align)
    max_tile = max(align, (max_tile // align) * align)
    if dim_al <= max_tile:
        return dim_al
    floor = min(max_tile, max(align, 128))
    best_t = max_tile
    best_pad = _round_up(dim, max_tile)
    t = max(floor, ((max_tile // 2) // align) * align)
    while True:
        padded = _round_up(dim, t)
        if padded < best_pad:
            best_t, best_pad = t, padded
        if t <= floor:
            break
        t = max(floor, ((t // 2) // align) * align)
    return best_t


def _linear3d_kernel_single_k(x_ref, w_ref, b_ref, o_ref):
    # x_ref: (tm, K), w_ref: (K, tn), b_ref: (1, tn), o_ref: (tm, tn)
    acc = jnp.dot(x_ref[...], w_ref[...], preferred_element_type=jnp.float32)
    o_ref[...] = (acc + b_ref[...].astype(jnp.float32)).astype(o_ref.dtype)


def _linear3d_kernel_tiled_k(x_ref, w_ref, b_ref, o_ref, acc_ref):
    # x_ref: (tm, tk), w_ref: (tk, tn), b_ref: (1, tn), o_ref: (tm, tn)
    # acc_ref: (tm, tn) f32 scratch, resident across the (innermost) K axis.
    k = pl.program_id(2)

    @pl.when(k == 0)
    def _():
        acc_ref[...] = jnp.zeros_like(acc_ref)

    acc_ref[...] += jnp.dot(
        x_ref[...], w_ref[...], preferred_element_type=jnp.float32)

    @pl.when(k == pl.num_programs(2) - 1)
    def _():
        o_ref[...] = (
            acc_ref[...] + b_ref[...].astype(jnp.float32)).astype(o_ref.dtype)


def linear3d(x, weight, bias, *, tm=512, tn=512, tk=2048,
             allow_weight_resident=True):
    """x: (..., K), weight: (K, X, Y), bias: (X, Y) -> (..., X, Y)."""
    K, X, Y = weight.shape
    assert x.shape[-1] == K, (x.shape, weight.shape)
    batch_shape = x.shape[:-1]
    B = int(math.prod(batch_shape)) if batch_shape else 1
    N = X * Y
    out_dtype = x.dtype

    x2 = x.reshape(B, K)
    w2 = weight.reshape(K, N)
    b2 = bias.reshape(1, N)

    xb = jnp.dtype(x.dtype).itemsize
    wb = jnp.dtype(weight.dtype).itemsize
    bb = jnp.dtype(bias.dtype).itemsize
    ob = jnp.dtype(out_dtype).itemsize
    sub = _sublane(x.dtype)

    vmem_limit, budget = _vmem_budgets()

    # Sanitize user tile hints: tm to the dtype sublane, tn/tk to full lanes
    # (tk must be a multiple of 128 so the x block's last dim lowers cleanly).
    tm = max(sub, _round_up(tm, sub))
    tn = max(128, _round_up(tn, 128))
    tk = max(128, _round_up(tk, 128))

    Np128 = _round_up(N, 128)

    # ------------------------------------------------------------------
    # Path selection.
    # ------------------------------------------------------------------
    tm_eff = _pick_tile(B, tm, sub)
    tile_k = False
    tk_eff = K

    def _resident_fp(tm_e):
        # Conservative: count 2 buffers for every BlockSpec operand.
        return 2 * (tm_e * K * xb + K * Np128 * wb + Np128 * bb
                    + tm_e * Np128 * ob)

    weight_resident = False
    if allow_weight_resident:
        # Don't let the x tile shrink pathologically just to keep the weight
        # resident when B is large.
        tm_floor = min(tm_eff, sub if B < 128 else max(sub, 128))
        tm_try = tm_eff
        while True:
            if _resident_fp(tm_try) <= budget:
                weight_resident = True
                tm_eff = tm_try
                break
            nxt = max(tm_floor, _round_up(max(1, tm_try // 2), sub))
            if nxt >= tm_try:
                break
            tm_try = nxt

    if weight_resident:
        tn_eff = Np128   # whole (padded) N in one block -> weight read once
        tile_k = False
        tk_eff = K       # full, unpadded K (block dim == array dim is legal)
    else:
        tn_eff = _pick_tile(N, tn, 128)
        if K > tk:
            tile_k = True
            tk_eff = tk

        def _tiled_fp(tm_e, tn_e, tk_e, tiled):
            f = 2 * (tm_e * tk_e * xb + tk_e * tn_e * wb + tn_e * bb
                     + tm_e * tn_e * ob)
            if tiled:
                f += tm_e * tn_e * 4  # f32 accumulator scratch
            return f

        # Shrink until the pipelined footprint fits the per-chip budget.
        for _ in range(64):
            if _tiled_fp(tm_eff, tn_eff, tk_eff, tile_k) <= budget:
                break
            if tile_k and tk_eff > 128:
                tk_eff = max(128, _round_up(tk_eff // 2, 128))
            elif (not tile_k) and K > 256:
                tile_k = True
                tk_eff = max(128, _round_up(K // 2, 128))
            elif tn_eff > 128:
                tn_eff = max(128, _round_up(tn_eff // 2, 128))
            elif tm_eff > sub:
                tm_eff = max(sub, _round_up(tm_eff // 2, sub))
            else:
                break

    Bp = _round_up(B, tm_eff)
    Np = _round_up(N, tn_eff)
    Kp = _round_up(K, tk_eff) if tile_k else K

    grid_m = Bp // tm_eff
    grid_n = Np // tn_eff

    # Guarantee >= 2 "parallel" blocks so the second TensorCore on 2-TC chips
    # (v7x megacore sharding over parallel axes) is not idle. Only split the
    # M tile when it adds no extra padding.
    if grid_m * grid_n == 1:
        half = _round_up(max(sub, (tm_eff + 1) // 2), sub)
        if half < tm_eff and _round_up(B, half) == Bp:
            tm_eff = half
            grid_m = Bp // tm_eff

    # Zero-pad: extra K rows/cols contribute 0 to the reduction; extra B rows
    # and N columns are sliced off afterwards. Pads are emitted only when
    # actually required -- aligned steady-state shapes (N % 128 == 0,
    # K % tk == 0, B % sublane == 0) pay nothing, and the single-K / resident
    # paths never pad K at all.
    if (Bp, Kp) != (B, K):
        x2 = jnp.pad(x2, ((0, Bp - B), (0, Kp - K)))
    if (Kp, Np) != (K, N):
        w2 = jnp.pad(w2, ((0, Kp - K), (0, Np - N)))
    if Np != N:
        b2 = jnp.pad(b2, ((0, 0), (0, Np - N)))

    # Advisory cost estimate with padded shapes, per-operand itemsizes and
    # actual re-stream factors (Pallas skips the DMA when the block index is
    # unchanged between consecutive grid steps).
    if tile_k:
        x_stream = grid_n * Bp * Kp * xb
        w_stream = grid_m * Kp * Np * wb
    else:
        x_stream = Bp * Kp * xb                       # x block constant in j
        w_stream = (1 if grid_n == 1 else grid_m) * Kp * Np * wb
    cost = pl.CostEstimate(
        flops=int(2 * Bp * Kp * Np),
        transcendentals=0,
        bytes_accessed=int(x_stream + w_stream + Bp * Np * ob + Np * bb),
    )

    if tile_k:
        grid = (grid_m, grid_n, Kp // tk_eff)
        in_specs = [
            pl.BlockSpec((tm_eff, tk_eff), lambda i, j, k: (i, k)),
            pl.BlockSpec((tk_eff, tn_eff), lambda i, j, k: (k, j)),
            pl.BlockSpec((1, tn_eff), lambda i, j, k: (0, j)),
        ]
        out_specs = pl.BlockSpec((tm_eff, tn_eff), lambda i, j, k: (i, j))
        scratch_shapes = [pltpu.VMEM((tm_eff, tn_eff), jnp.float32)]
        dim_sem = ("parallel", "parallel", "arbitrary")
        kernel = _linear3d_kernel_tiled_k
    else:
        grid = (grid_m, grid_n)
        in_specs = [
            pl.BlockSpec((tm_eff, Kp), lambda i, j: (i, 0)),
            pl.BlockSpec((Kp, tn_eff), lambda i, j: (0, j)),
            pl.BlockSpec((1, tn_eff), lambda i, j: (0, j)),
        ]
        out_specs = pl.BlockSpec((tm_eff, tn_eff), lambda i, j: (i, j))
        scratch_shapes = []
        dim_sem = ("parallel", "parallel")
        kernel = _linear3d_kernel_single_k

    out_p = pl.pallas_call(
        kernel,
        out_shape=jax.ShapeDtypeStruct((Bp, Np), out_dtype),
        grid_spec=pltpu.PrefetchScalarGridSpec(
            num_scalar_prefetch=0,
            grid=grid,
            in_specs=in_specs,
            out_specs=out_specs,
            scratch_shapes=scratch_shapes,
        ),
        compiler_params=pltpu.CompilerParams(
            dimension_semantics=dim_sem,
            vmem_limit_bytes=int(vmem_limit),
        ),
        cost_estimate=cost,
    )(x2, w2, b2)

    out2 = out_p[:B, :N]
    return out2.reshape(*batch_shape, X, Y)


def init_params(key, input_size, output_size1, output_size2, dtype=jnp.float32):
    """Deterministic init mimicking the PyTorch module's reset_parameters."""
    kw, kb = jax.random.split(key)
    # xavier_uniform_ on a 3D tensor (K, X, Y): fan_in = X*Y, fan_out = K*Y
    fan_in_w = output_size1 * output_size2
    fan_out_w = input_size * output_size2
    bound_w = math.sqrt(6.0 / (fan_in_w + fan_out_w))
    weight = jax.random.uniform(
        kw, (input_size, output_size1, output_size2),
        minval=-bound_w, maxval=bound_w, dtype=dtype)
    # bias: uniform(-1/sqrt(fan_in), 1/sqrt(fan_in)) with fan_in = input_size
    bound_b = 1.0 / math.sqrt(input_size)
    bias = jax.random.uniform(
        kb, (output_size1, output_size2),
        minval=-bound_b, maxval=bound_b, dtype=dtype)
    return weight, bias


if __name__ == "__main__":
    key = jax.random.PRNGKey(0)
    k_in, k_param, k_in2, k_param2, k_in3, k_param3 = jax.random.split(key, 6)

    # 1) Small shapes implied by the module: (batch, seq, K) -> (batch, seq, X, Y)
    #    Exercises the weight-resident single-K fast path.
    input_size = 32      # K
    output_size1 = 4     # X
    output_size2 = 8     # Y
    batch, seq = 2, 8

    x = jax.random.normal(k_in, (batch, seq, input_size), dtype=jnp.float32)
    weight, bias = init_params(k_param, input_size, output_size1, output_size2)

    out = jax.block_until_ready(linear3d(x, weight, bias))
    ref = jnp.einsum('...k,kxy->...xy', x, weight) + bias
    assert out.shape == (batch, seq, output_size1, output_size2)
    assert jnp.allclose(out, ref, atol=1e-5, rtol=1e-5)

    # 2) Exercise the K-tiled accumulator path (disable the resident fast path
    #    so K > tk actually tiles the reduction axis over the grid).
    K2 = 512
    x_big = jax.random.normal(k_in2, (batch, seq, K2), dtype=jnp.float32)
    w_big, b_big = init_params(k_param2, K2, output_size1, output_size2)
    out_big = jax.block_until_ready(
        linear3d(x_big, w_big, b_big, tk=256, allow_weight_resident=False))
    ref_big = jnp.einsum('...k,kxy->...xy', x_big, w_big) + b_big
    assert out_big.shape == (batch, seq, output_size1, output_size2)
    assert jnp.allclose(out_big, ref_big, atol=1e-4, rtol=1e-4)

    # 3) Ragged shapes: exercises B / N padding + output slicing.
    x_odd = jax.random.normal(k_in3, (3, 5, 100), dtype=jnp.float32)
    w_odd, b_odd = init_params(k_param3, 100, 3, 7)
    out_odd = jax.block_until_ready(linear3d(x_odd, w_odd, b_odd))
    ref_odd = jnp.einsum('...k,kxy->...xy', x_odd, w_odd) + b_odd
    assert out_odd.shape == (3, 5, 3, 7)
    assert jnp.allclose(out_odd, ref_odd, atol=1e-5, rtol=1e-5)

    print("KERNEL_OK")
</pallas_src>

<mosaic_0001>
module attributes {stable_mosaic.version = 11 : i64} {
  func.func @_linear3d_kernel_single_k(%arg0: i32, %arg1: i32, %arg2: memref<8x32xf32, #tpu.memory_space<vmem>>, %arg3: memref<32x128xf32, #tpu.memory_space<vmem>>, %arg4: memref<1x128xf32, #tpu.memory_space<vmem>>, %arg5: memref<8x128xf32, #tpu.memory_space<vmem>>) attributes {dimension_semantics = [#tpu.dimension_semantics<parallel>, #tpu.dimension_semantics<parallel>], iteration_bounds = array<i64: 2, 1>, scalar_prefetch = 0 : i64, scratch_operands = 0 : i64, tpu.core_type = #tpu.core_type<tc>, window_params = [{transform_indices = @transform_0, window_bounds = array<i64: 8, 32>}, {transform_indices = @transform_1, window_bounds = array<i64: 32, 128>}, {transform_indices = @transform_2, window_bounds = array<i64: 1, 128>}, {transform_indices = @transform_3, window_bounds = array<i64: 8, 128>}]} {
    %c0 = arith.constant 0 : index
    %c0_0 = arith.constant 0 : index
    %0 = vector.load %arg2[%c0, %c0_0] : memref<8x32xf32, #tpu.memory_space<vmem>>, vector<8x32xf32>
    %c0_1 = arith.constant 0 : index
    %c0_2 = arith.constant 0 : index
    %1 = vector.load %arg3[%c0_1, %c0_2] : memref<32x128xf32, #tpu.memory_space<vmem>>, vector<32x128xf32>
    %cst = arith.constant dense<0.000000e+00> : vector<8x128xf32>
    %2 = tpu.matmul %0, %1, %cst {dimension_numbers = #tpu.dot_dimension_numbers<[1], [0], [0], [1], [0, 0, 1, 1], [], []>} : vector<8x32xf32>, vector<32x128xf32>, vector<8x128xf32> -> vector<8x128xf32>
    %c0_3 = arith.constant 0 : index
    %c0_4 = arith.constant 0 : index
    %3 = vector.load %arg4[%c0_3, %c0_4] : memref<1x128xf32, #tpu.memory_space<vmem>>, vector<1x128xf32>
    %4 = vector.broadcast %3 : vector<1x128xf32> to vector<8x128xf32>
    %5 = arith.addf %2, %4 : vector<8x128xf32>
    %c0_5 = arith.constant 0 : index
    %c0_6 = arith.constant 0 : index
    %6 = vector.load %arg5[%c0_5, %c0_6] : memref<8x128xf32, #tpu.memory_space<vmem>>, vector<8x128xf32>
    tpu.vector_store %arg5[%c0_5, %c0_6], %5 {strides = array<i32>} : memref<8x128xf32, #tpu.memory_space<vmem>>, vector<8x128xf32>,
    return
  }
  func.func @transform_0(%arg0: i32, %arg1: i32) -> (i32, i32) {
    %c0_i32 = arith.constant 0 : i32
    %c0_i32_0 = arith.constant 0 : i32
    return %arg0, %c0_i32 : i32, i32
  }
  func.func @transform_1(%arg0: i32, %arg1: i32) -> (i32, i32) {
    %c0_i32 = arith.constant 0 : i32
    %c0_i32_0 = arith.constant 0 : i32
    return %c0_i32, %arg1 : i32, i32
  }
  func.func @transform_2(%arg0: i32, %arg1: i32) -> (i32, i32) {
    %c0_i32 = arith.constant 0 : i32
    %c0_i32_0 = arith.constant 0 : i32
    return %c0_i32, %arg1 : i32, i32
  }
  func.func @transform_3(%arg0: i32, %arg1: i32) -> (i32, i32) {
    %c0_i32 = arith.constant 0 : i32
    return %arg0, %arg1 : i32, i32
  }
}

</mosaic_0001>

<bundles_post_ra>
// kernel: tpu_custom_call.1
= control target key start
LH: loop header
LB: loop body
LE: loop exit
PB: predicated region body
PF: predicated region fallthrough
CT: control target
= control target key end

     0   :  { %8 = vsyncpa [#allocation3], 0  ;;  %s804_s0 = inlined_call_operand.hbm [shape: f32[16,32], index: 0, kind: input, shape index: {}]   ;;  %s805_s1 = inlined_call_operand.hbm [shape: f32[32,128], index: 1, kind: input, shape index: {}]   ;;  %s806_s2 = inlined_call_operand.vmem [shape: f32[1,128], index: 2, kind: input, shape index: {}]   ;;  %s807_s3 = inlined_call_operand.hbm [shape: f32[16,128], index: 3, kind: output, shape index: {}]  }
   0x1   :  { %10 = vsyncpa [#allocation3 + $0x1], 0 }
   0x2   :  { %11 = vsyncpa [#allocation6], 0 }
   0x3   :  { %12 = vsyncpa [#allocation4], 0 }
   0x4   :  { %14 = vsyncpa [#allocation4 + $0x1], 0  ;;  %s658_s12 = smov 0   ;;  %s660_s13 = smov 0  }
   0x5   :  { %s662_s14 = smov 0   ;;  %s664_s15 = smov 0  }
   0x6   :  { %s666_s16 = smov 0   ;;  %s668_s17 = smov 0  }
   0x7 LB: > { %s394_s18 = sadd.s32 4294967295, %s633_s17   ;;  %p396_p0 = scmp.ge.s32.totalorder %s633_s17, 1  ;;  %s633_s17 = sphi %s668_s17, %s20_s17   ;;  %s629_s16 = sphi %s666_s16, %s818_s16   ;;  %s625_s15 = sphi %s664_s15, %s817_s15   ;;  %s621_s14 = sphi %s662_s14, %s816_s14   ;;  %s617_s13 = sphi %s660_s13, %s815_s13   ;;  %s613_s12 = sphi %s658_s12, %s814_s12  }
   0x8   : > { %p690_p1 = scmp.eq.s32.totalorder %s394_s18, 0  ;;  %p143_p2 = scmp.lt.s32.totalorder %s633_s17, 3 }
   0x9   : > { %s156_s22 = sshll.u32 %s805_s1, 4  ;;  %s635_s24 = smov [#allocation5]   ;;  %s157_s22 = int_to_ptr.hbm [resolvable:$true] %s156_s22 }
   0xa   : > { %p698_p3 = pnand %p396_p0, %p143_p2  ;;  %s158_s25 = sshll.u32 %s635_s24, 4  ;;  %s159_s25 = int_to_ptr.vmem [resolvable:$true] %s158_s25 }
   0xb   : > { %p399_p6 = scmp.ge.s32.totalorder %s633_s17, 2  ;;  %s636_s26 = smov 128  }
   0xc   : > { %p419_p4 = pneg %p698_p3  ;;  %s637_s27 = smov 8  }
   0xd   : > { %s395_s28 = sadd.s32 4294967294, %s633_s17   ;;  %s32_s29 = sadd.s32 1, %s629_s16 }
   0xe   : > { %p420_p5 = pnand %p419_p4, %p690_p1  ;;  %s39_s30 = sadd.s32 1, %s621_s14 }
   0xf   : > { %p34_p7 = scmp.ge.s32.totalorder %s32_s29, 2  ;;  %p46_p8 = scmp.ne.s32.totalorder %s621_s14, %s617_s13 }
  0x10   : > { %422 = dma.hbm_to_vmem [thread:$0]  (!%p420_p5), %s157_s22, 512, %s159_s25, [#allocation6], %s636_s26, %s636_s26, %s637_s27  }
  0x11   : > { %p47_p9 = scmp.eq.s32.totalorder %s633_s17, 0  ;;  %p52_p10 = scmp.ne.s32.totalorder %s617_s13, %s613_s12 }
  0x12   : > { %s820_s29 = smov (%p34_p7, %s32_s29), 0  ;;  %p130_p13 = scmp.eq.s32.totalorder %s394_s18, 1 }
  0x13   : > { %p717_p11 = por %p47_p9, %p46_p8  ;;  %p723_p12 = por %p690_p1, %p52_p10 }
  0x14   : > { %s36_s6 = ssub.s32 %s629_s16, %s820_s29  ;;  %p136_p2 = scmp.eq.s32.totalorder %s395_s28, 1 }
  0x15   : > { %p37_p0 = scmp.eq.s32.totalorder %s36_s6, 0  ;;  %p729_p4 = por %p130_p13, %p46_p8 }
  0x16   : > { %p432_p5 = scmp.lt.s32.totalorder %s633_s17, 2  ;;  %p737_p7 = por %p136_p2, %p52_p10 }
  0x17   : > { %s735_s8 = scalar_select %p37_p0, %s621_s14, %s39_s30  }
  0x18   : > { %s178_s10 = sand.u32 1, %s621_s14   ;;  %s401_s20 = sshll.u32 %s629_s16, 3 }
  0x19   : > { %s400_s11 = sshll.u32 %s178_s10, 3  ;;  %s186_s18 = scalar_lea.hbm %s804_s0, %s401_s20 }
  0x1a   : > { %s182_s24 = scalar_lea.vmem [#allocation2], %s400_s11  ;;  %s188_s26 = sshll.u32 %s186_s18, 4  ;;  %s189_s26 = int_to_ptr.hbm [resolvable:$true] %s188_s26 }
  0x1b   : > { %s190_s25 = sshll.u32 %s182_s24, 4  ;;  %p424_p8 = pnand %p432_p5, %p717_p11  ;;  %s191_s25 = int_to_ptr.vmem [resolvable:$true] %s190_s25 }
  0x1c   : > { %s179_s27 = scalar_lea.sflag [#allocation3], %s178_s10  ;;  %199 = sbr.rel (%p698_p3) target bundleno = 175 (0xaf), region = 32 }
  0x1d   : > { %426 = dma.hbm_to_vmem [thread:$0]  (!%p424_p8), %s189_s26, 128, %s191_s25, %s179_s27  }
  0x1e   : > { %s751_s28 = sand.u32 (!%p698_p3), 1, %s617_s13  }
  0x1f   : > { %s403_s30 = sshll.u32 (!%p698_p3), %s751_s28, 3  ;;  %s202_s6 = scalar_lea.sflag (!%p698_p3), [#allocation3], %s751_s28 }
  0x20   : > { %s205_s11 = scalar_lea.vmem (!%p698_p3), [#allocation2], %s403_s30 }
  0x21   : > { %600 = dma.done.wait (%p723_p12), %s202_s6, 128  }
  0x22   : > { %602 = vsyncadd (%p723_p12), %s202_s6, 4294967168 }
  0x23   : > { %604 = dma.done.wait (%p690_p1), [#allocation6], 512  }
  0x24   : > { %606 = vsyncadd (%p690_p1), [#allocation6], 4294966784  ;;  %v244_v0 = vld [vmem:[#allocation5 + $0x18] sm:$0xff]  ;;  %v243_v1 = vld [vmem:[#allocation5 + $0x10] sm:$0xff]  ;;  %vm249_vm0 = vcmask 261120   ;;  %s408_s23 = sshll.u32 %s625_s15, 3 }
  0x25   : > { %265 = vmatpush.msra.mxu0 %v244_v0  ;;  %v242_v2 = vld [vmem:[#allocation5 + $0x8] sm:$0xff]  ;;  %v241_v3 = vld [vmem:[#allocation5] sm:$0xff]  ;;  %v240_v4 = vld [vmem:[%s205_s11] sm:$0xff]  ;;  %s286_s19 = scalar_lea.hbm %s807_s3, %s408_s23  ;;  %s236_s21 = scalar_lea.vmem [#allocation7], %s403_s30 }
  0x26   : > { %v486_v5 = vld [vmem:[%s806_s2] ss:$0 sm:$0xff]  ;;  %s288_s22 = sshll.u32 %s236_s21, 4  ;;  %s290_s18 = sshll.u32 %s286_s19, 4  ;;  %s289_s22 = int_to_ptr.vmem [resolvable:$true] %s288_s22  ;;  %s291_s18 = int_to_ptr.hbm [resolvable:$true] %s290_s18 }
  0x27   : > { %266 = vmatpush.msra.mxu0 %v243_v1  ;;  %s275_s24 = scalar_lea.sflag [#allocation4], %s751_s28  ;;  %s561_s25 = sshra.s32 %s291_s18, 4  ;;  %s562_s25 = int_to_ptr.hbm [resolvable:$true] %s561_s25 }
  0x28   : > { %s563_s15 = scalar_lea.hbm %s562_s25, 8  ;;  %s567_s6 = scalar_lea.hbm %s807_s3, 16 }
  0x29   : > { %267 = vmatpush.msra.mxu0 %v242_v2  ;;  %p564_p1 = scmp.ne.s32.totalorder %s562_s25, %s563_s15  ;;  %p568_p10 = scmp.lt.s32.totalorder %s562_s25, %s807_s3 }
  0x2a   : > { %p569_p11 = scmp.lt.s32.totalorder %s567_s6, %s563_s15 }
  0x2b   : > { %268 = vmatpush.msra.mxu0 %v241_v3  ;;  %p565_p3 = pnand %p564_p1, %p729_p4 }
  0x2c   : > { %406 = vmatmul.msk.f32.vlgmr.msra.gmra.mxu0 %vm249_vm0, %v240_v4  ;;  %p570_p12 = por %p569_p11, %p568_p10 }
  0x2d   : > { %p566_p9 = pneg %p565_p3 }
  0x2f   : > { %p571_p13 = pnand %p570_p12, %p566_p9 }
  0xa9   : > { %v270_v6 = vpop.f32.mrf.mxu0 }
  0xaa   : > { %v271_v7 = vadd.f32 %v486_v5, %v270_v6 }
  0xac   : > { %273 = vst [vmem:[%s236_s21] sm:$0xff] %v271_v7 }
  0xad   : > { %574 = shalt.err (!%p571_p13)
}
  0xae   : > { %417 = dma.vmem_to_hbm [thread:$0]  (%p729_p4), %s289_s22, 128, %s291_s18, %s275_s24  }
  0xaf PF: > { %s302_s28 = sand.u32 1, %s613_s12   ;;  %p428_p0 = pnand %p399_p6, %p737_p7 }
  0xb0   : > { %s303_s23 = scalar_lea.sflag [#allocation4], %s302_s28 }
  0xb1   : > { %p429_p2 = pneg %p428_p0 }
  0xb3   : > { %608 = dma.done.wait (%p429_p2), %s303_s23, 128  }
  0xb4   : > { %610 = vsyncadd (%p429_p2), %s303_s23, 4294967168  ;;  %s20_s17 = sadd.s32 1, %s633_s17   ;;  %s814_s12 = smov %s617_s13 }
  0xb5   : > { %p17_p5 = scmp.ge.s32.totalorder %s20_s17, 4   ;;  %s815_s13 = smov %s621_s14 }
  0xb6   : > { %s816_s14 = smov %s735_s8  ;;  %s817_s15 = smov %s629_s16 }
  0xb7   : > { %s818_s16 = smov %s820_s29  ;;  %19 = sbr.rel (!%p17_p5) target bundleno = 7 (0x7), region = 85 }
  0xbc   :  { %309 = vsyncpa [#allocation3], 1 }
  0xbd   :  { %311 = vsyncpa [#allocation3 + $0x1], 1 }
  0xbe   :  { %312 = vsyncpa [#allocation6], 1 }
  0xbf   :  { %313 = vsyncpa [#allocation4], 1 }
  0xc0   :  { %315 = vsyncpa [#allocation4 + $0x1], 1 }

</bundles_post_ra>
